<compile_context>
chip_gen: v5e
topology: v5e:2x2
jax: 0.10.0
libtpu: 0.0.40
codegen_flags: <defaults>
</compile_context>

<pallas_src>
from dataclasses import dataclass

import jax
import jax.numpy as jnp
import numpy as np
from jax.experimental import pallas as pl
from jax.experimental.pallas import tpu as pltpu


def _round_up(x, m):
    return ((x + m - 1) // m) * m


def _vmem_capacity_bytes():
    try:
        return int(pltpu.get_tpu_info().vmem_capacity_bytes)
    except Exception:
        return 64 * 2**20  # conservative (v7x-sized) fallback


# ----------------------------------------------------------------------------
# Planning (tile sizes / padding), done once per problem shape.
# ----------------------------------------------------------------------------
@dataclass(frozen=True)
class FbpPlan:
    B: int; NA: int; D: int; out_sz: int
    K: int; OUT: int
    tb: int; tk: int; tout: int; tr: int
    Bp: int; Kp: int; OUTp: int; Rp: int
    compute_dtype: object
    vmem_limit_bytes: int


def make_fbp_plan(B, NA, D, out_sz, compute_dtype=jnp.bfloat16,
                  tb=None, tk=None, tout=None):
    """Pick generation-aware tiles.  Stage 2 is pure HBM streaming of A, so A
    tiles are multi-MB (near-roofline DMA); VMEM budget is derived from the
    actual chip (64 MiB on v7x, 128 MiB on v5e/v6e)."""
    K = NA * D
    OUT = out_sz * out_sz
    itemsize = jnp.dtype(compute_dtype).itemsize
    cap = _vmem_capacity_bytes()

    # Large streaming tiles are the default (not just doc text).
    if tk is None:
        tk = 2048 if cap >= 96 * 2**20 else 1024   # v5e/v6e : v7x
    if tout is None:
        tout = 4096
    tk = max(128, min(tk, _round_up(K, 128)))
    tout = max(128, min(tout, _round_up(OUT, 128)))
    Kp = _round_up(K, tk)
    OUTp = _round_up(OUT, tout)

    # Batch tile: sublane-friendly (>= 8), capped at the 256-wide MXU, and
    # limited so the K-resident flt block (tb, Kp) stays <= ~8 MiB per buffer.
    if tb is None:
        flt_budget = 8 * 2**20
        tb_fit = max(8, (flt_budget // (Kp * itemsize)) // 8 * 8)
        tb = int(min(256, max(8, _round_up(B, 8)), tb_fit))
    Bp = _round_up(B, tb)

    # Stage-1 row tile over the (B*NA, D) filter matmul.
    R = B * NA
    tr = min(512, _round_up(R, 8))
    Rp = _round_up(R, tr)

    # Double-buffered VMEM footprint of stage 2.
    vmem_needed = (2 * tb * Kp * itemsize        # flt, resident over K
                   + 2 * tk * tout * itemsize    # A tile double-buffer
                   + 2 * tb * tout * 4)          # f32 output block
    vmem_limit = int(min(int(0.85 * cap),
                         max(32 * 2**20, vmem_needed + 4 * 2**20)))

    return FbpPlan(B=B, NA=NA, D=D, out_sz=out_sz, K=K, OUT=OUT,
                   tb=tb, tk=tk, tout=tout, tr=tr,
                   Bp=Bp, Kp=Kp, OUTp=OUTp, Rp=Rp,
                   compute_dtype=compute_dtype,
                   vmem_limit_bytes=vmem_limit)


def toeplitz_filter_matrix(filt, D):
    """Exact matrix form of PyTorch's cross-correlation with 'same' zero pad:
    out[i] = sum_k w[k] * in[i + k - half]  =>  M[j, i] = w[j - i + half]."""
    F = filt.shape[0]
    half = F // 2
    j = jnp.arange(D)[:, None]
    i = jnp.arange(D)[None, :]
    k = j - i + half
    return jnp.where((k >= 0) & (k < F),
                     filt[jnp.clip(k, 0, F - 1)], 0.0).astype(jnp.float32)


def prepare_fbp_constants(filt, A_ko, plan):
    """One-time offline prep — cache the results, do NOT rebuild per forward.

    filt : (F,) f32 filter taps  -> (D, D) Toeplitz matrix.
    A_ko : (K, OUT) system matrix already in (K, OUT) layout (A.T of the torch
           sparse (OUT, K) matrix) -> cast to the streaming dtype and padded
           to the plan's (Kp, OUTp) once.
    """
    conv_mat = toeplitz_filter_matrix(filt, plan.D)
    # TODO(synk): at real scale, quantize A per-tile to int8 (v5e/v6e) or fp8
    # (v7x) with per-tile scales, and exploit the ~1%-dense real COO A by
    # skipping empty (k, o) tiles via PrefetchScalarGridSpec; both are offline
    # transforms of this cached matrix.
    K, OUT = A_ko.shape
    A = A_ko.astype(plan.compute_dtype)
    if (plan.Kp, plan.OUTp) != (K, OUT):
        A = jnp.pad(A, ((0, plan.Kp - K), (0, plan.OUTp - OUT)))
    return conv_mat, A


# ----------------------------------------------------------------------------
# Stage 1: 'same' 1-D FBP filter along detectors as a row-tiled Toeplitz matmul.
# ----------------------------------------------------------------------------
def _filter_kernel(r_ref, conv_ref, o_ref):
    # r_ref   : (tr, D) cosine-weighted sinogram rows (f32)
    # conv_ref: (D, D)  Toeplitz 'same' filter matrix (f32)
    # o_ref   : (tr, D) filtered rows, emitted in the stage-2 compute dtype
    o_ref[...] = jnp.dot(r_ref[...], conv_ref[...],
                         preferred_element_type=jnp.float32).astype(o_ref.dtype)


# ----------------------------------------------------------------------------
# Stage 2: backprojection  out[b, o] = clip( sum_k flt[b, k] * A[k, o], 0, 1 ).
# flt is K-resident in VMEM (sliced in-kernel); A streams tile-by-tile; the
# f32 output block is resident across the K axis and accumulated directly.
# ----------------------------------------------------------------------------
def _backproject_kernel(flt_ref, a_ref, o_ref):
    # flt_ref: (tb, Kp)   full-K filtered sinogram (bf16, resident)
    # a_ref  : (tk, tout) streamed tile of the system matrix (bf16)
    # o_ref  : (tb, tout) f32 output block (resident across K)
    k = pl.program_id(2)
    tk = a_ref.shape[0]

    @pl.when(k == 0)
    def _():
        o_ref[...] = jnp.zeros_like(o_ref)

    start = pl.multiple_of(k * tk, 128)
    o_ref[...] += jnp.dot(flt_ref[:, pl.ds(start, tk)], a_ref[...],
                          preferred_element_type=jnp.float32)

    @pl.when(k == pl.num_programs(2) - 1)
    def _():
        o_ref[...] = jnp.clip(o_ref[...], 0.0, 1.0)


def fbp_forward(sin_fan, cos_w, conv_mat, A_prepared, plan):
    """FbpLayer.forward.

    sin_fan    : (B, NA, D) f32 sinogram
    cos_w      : (NA, D)    f32 cosine weights
    conv_mat   : (D, D)     cached Toeplitz filter matrix (prepare_fbp_constants)
    A_prepared : (Kp, OUTp) cached, pre-cast, pre-padded system matrix
    returns    : (B, out_sz, out_sz, 1) f32, clamped to [0, 1]
    """
    B, NA, D = sin_fan.shape
    assert (B, NA, D) == (plan.B, plan.NA, plan.D), (sin_fan.shape, plan)
    if (A_prepared.shape != (plan.Kp, plan.OUTp)
            or A_prepared.dtype != jnp.dtype(plan.compute_dtype)):
        raise ValueError(
            "A must be prepared once via prepare_fbp_constants (pre-cast + "
            "pre-padded); refusing to copy the large matrix per call.")

    # --- stage 1: cosine weighting + FBP filter -------------------------------
    # The cos weighting is a tiny fused XLA elementwise op; the F-tap 'same'
    # conv is a single row-tiled (B*NA, D) @ (D, D) matmul on the MXU.
    R = B * NA
    r = (sin_fan * cos_w[None].astype(sin_fan.dtype)).reshape(R, D)
    if plan.Rp != R:
        r = jnp.pad(r, ((0, plan.Rp - R), (0, 0)))

    flt = pl.pallas_call(
        _filter_kernel,
        out_shape=jax.ShapeDtypeStruct((plan.Rp, D), plan.compute_dtype),
        grid=(plan.Rp // plan.tr,),
        in_specs=[
            pl.BlockSpec((plan.tr, D), lambda i: (i, 0)),
            pl.BlockSpec((D, D), lambda i: (0, 0)),
        ],
        out_specs=pl.BlockSpec((plan.tr, D), lambda i: (i, 0)),
        compiler_params=pltpu.CompilerParams(
            dimension_semantics=("parallel",)),
    )(r, conv_mat)

    # Row-major flatten (n, d) -> k = n*D + d matches the torch reshape.
    flt = flt[:R].reshape(B, plan.K)
    pad_b, pad_k = plan.Bp - B, plan.Kp - plan.K
    if pad_b or pad_k:
        flt = jnp.pad(flt, ((0, pad_b), (0, pad_k)))   # tiny

    # --- stage 2: tiled backprojection matmul with fused clip -----------------
    out = pl.pallas_call(
        _backproject_kernel,
        out_shape=jax.ShapeDtypeStruct((plan.Bp, plan.OUTp), jnp.float32),
        grid=(plan.OUTp // plan.tout, plan.Bp // plan.tb, plan.Kp // plan.tk),
        in_specs=[
            pl.BlockSpec((plan.tb, plan.Kp), lambda o, b, k: (b, 0)),
            pl.BlockSpec((plan.tk, plan.tout), lambda o, b, k: (k, o)),
        ],
        out_specs=pl.BlockSpec((plan.tb, plan.tout), lambda o, b, k: (b, o)),
        compiler_params=pltpu.CompilerParams(
            dimension_semantics=("parallel", "parallel", "arbitrary"),
            vmem_limit_bytes=plan.vmem_limit_bytes),
    )(flt, A_prepared)

    out = out[:B, :plan.OUT]
    return out.reshape(B, plan.out_sz, plan.out_sz, 1)


def ref_forward(sin_fan, cos_w, filt, A_ko, out_sz):
    """Pure-JAX f32 reference mirroring the torch semantics."""
    B, NA, D = sin_fan.shape
    F = filt.shape[0]
    half = F // 2
    r = sin_fan * cos_w[None]
    rp = jnp.pad(r, ((0, 0), (0, 0), (half, F - 1 - half)))
    flt = jnp.zeros_like(r)
    for k in range(F):
        flt = flt + filt[k] * rp[:, :, k:k + D]
    x = flt.reshape(B, NA * D)
    out = jnp.dot(x, A_ko, precision=jax.lax.Precision.HIGHEST)
    out = jnp.clip(out, 0.0, 1.0)
    return out.reshape(B, out_sz, out_sz, 1)


if __name__ == "__main__":
    # Small shapes consistent with the module's structure:
    #   real: NA=360 angles, D=357 detectors, F=713 taps, image 256x256,
    #         A sparse (65536, 128520)
    #   here: B=4, NA=8, D=32, F=63, image 16x16, dense A (K=256, OUT=256)
    B, NA, D = 4, 8, 32
    F = 2 * D - 1
    out_sz = 16
    K, OUT = NA * D, out_sz * out_sz

    key = jax.random.PRNGKey(0)
    k_sin, k_cos, k_filt, k_a = jax.random.split(key, 4)

    sin_fan = jax.random.uniform(k_sin, (B, NA, D), dtype=jnp.float32)
    cos_w = 0.5 + 0.5 * jax.random.uniform(k_cos, (NA, D), dtype=jnp.float32)
    filt = 0.05 * jax.random.normal(k_filt, (F,), dtype=jnp.float32)
    # TODO(synk): the real module loads a sparse COO A from Matrix_A.npz; here a
    # synthetic dense A is generated directly in the (K, OUT) layout the kernel
    # streams (A.T of the torch (OUT, K) matrix), and the matmul is done densely.
    A_ko = jax.random.uniform(k_a, (K, OUT), dtype=jnp.float32) * (2.0 / K)

    plan = make_fbp_plan(B, NA, D, out_sz)
    # One-time (cached) prep: Toeplitz filter matrix + pre-cast/pre-padded A.
    conv_mat, A_prep = prepare_fbp_constants(filt, A_ko, plan)
    conv_mat = jax.block_until_ready(conv_mat)
    A_prep = jax.block_until_ready(A_prep)

    out = fbp_forward(sin_fan, cos_w, conv_mat, A_prep, plan)
    out = jax.block_until_ready(out)

    ref = jax.block_until_ready(ref_forward(sin_fan, cos_w, filt, A_ko, out_sz))
    assert out.shape == (B, out_sz, out_sz, 1), out.shape
    # bf16 flt/A stream with f32 accumulation vs an f32 HIGHEST-precision ref.
    np.testing.assert_allclose(np.asarray(out), np.asarray(ref),
                               rtol=1e-2, atol=1e-2)
    print("KERNEL_OK")
</pallas_src>

<mosaic_0001>
module attributes {stable_mosaic.version = 11 : i64} {
  func.func @_filter_kernel(%arg0: i32, %arg1: memref<32x32xf32, #tpu.memory_space<vmem>>, %arg2: memref<32x32xf32, #tpu.memory_space<vmem>>, %arg3: memref<32x32xbf16, #tpu.memory_space<vmem>>) attributes {dimension_semantics = [#tpu.dimension_semantics<parallel>], iteration_bounds = array<i64: 1>, scalar_prefetch = 0 : i64, scratch_operands = 0 : i64, tpu.core_type = #tpu.core_type<tc>, window_params = [{transform_indices = @transform_0, window_bounds = array<i64: 32, 32>}, {pipeline_mode = #tpu.pipeline_mode<synchronous>, transform_indices = @transform_1, window_bounds = array<i64: 32, 32>}, {transform_indices = @transform_2, window_bounds = array<i64: 32, 32>}]} {
    %c0 = arith.constant 0 : index
    %c0_0 = arith.constant 0 : index
    %0 = vector.load %arg1[%c0, %c0_0] : memref<32x32xf32, #tpu.memory_space<vmem>>, vector<32x32xf32>
    %c0_1 = arith.constant 0 : index
    %c0_2 = arith.constant 0 : index
    %1 = vector.load %arg2[%c0_1, %c0_2] : memref<32x32xf32, #tpu.memory_space<vmem>>, vector<32x32xf32>
    %cst = arith.constant dense<0.000000e+00> : vector<32x32xf32>
    %2 = tpu.matmul %0, %1, %cst {dimension_numbers = #tpu.dot_dimension_numbers<[1], [0], [0], [1], [0, 0, 1, 1], [], []>} : vector<32x32xf32>, vector<32x32xf32>, vector<32x32xf32> -> vector<32x32xf32>
    %3 = arith.truncf %2 : vector<32x32xf32> to vector<32x32xbf16>
    %c0_3 = arith.constant 0 : index
    %c0_4 = arith.constant 0 : index
    %4 = vector.load %arg3[%c0_3, %c0_4] : memref<32x32xbf16, #tpu.memory_space<vmem>>, vector<32x32xbf16>
    tpu.vector_store %arg3[%c0_3, %c0_4], %3 {strides = array<i32>} : memref<32x32xbf16, #tpu.memory_space<vmem>>, vector<32x32xbf16>,
    return
  }
  func.func @transform_0(%arg0: i32) -> (i32, i32) {
    %c0_i32 = arith.constant 0 : i32
    %c0_i32_0 = arith.constant 0 : i32
    return %arg0, %c0_i32 : i32, i32
  }
  func.func @transform_1(%arg0: i32) -> (i32, i32) {
    %c0_i32 = arith.constant 0 : i32
    %c0_i32_0 = arith.constant 0 : i32
    %c0_i32_1 = arith.constant 0 : i32
    return %c0_i32, %c0_i32_0 : i32, i32
  }
  func.func @transform_2(%arg0: i32) -> (i32, i32) {
    %c0_i32 = arith.constant 0 : i32
    %c0_i32_0 = arith.constant 0 : i32
    return %arg0, %c0_i32 : i32, i32
  }
}

</mosaic_0001>

<bundles_post_ra>
// kernel: tpu_custom_call.1
= control target key start
LH: loop header
LB: loop body
LE: loop exit
PB: predicated region body
PF: predicated region fallthrough
CT: control target
= control target key end

     0   :  { %7 = vsyncpa [#allocation3], 0  ;;  %s259_s0 = inlined_call_operand.hbm [shape: f32[32,32], index: 0, kind: input, shape index: {}]   ;;  %s260_s1 = inlined_call_operand.hbm [shape: f32[32,32], index: 1, kind: input, shape index: {}]   ;;  %s261_s2 = inlined_call_operand.hbm [shape: bf16[32,32], index: 2, kind: output, shape index: {}]  }
   0x1   :  { %8 = vsyncpa [#allocation6], 0 }
   0x2   :  { %9 = vsyncpa [#allocation4], 0  ;;  %s14_s11 = sshll.u32 %s259_s0, 4  ;;  %s224_s12 = smov [#allocation2]   ;;  %s15_s11 = int_to_ptr.hbm [resolvable:$true] %s14_s11 }
   0x3   :  { %s16_s13 = sshll.u32 %s224_s12, 4  ;;  %s27_s16 = sshll.u32 %s260_s1, 4  ;;  %s17_s13 = int_to_ptr.vmem [resolvable:$true] %s16_s13  ;;  %s28_s16 = int_to_ptr.hbm [resolvable:$true] %s27_s16 }
   0x4   :  { %s225_s17 = smov 128   ;;  %s226_s18 = smov 8  }
   0x5   :  { %22 = dma.hbm_to_vmem [thread:$0]  %s15_s11, 512, %s17_s13, [#allocation3], %s225_s17, %s225_s17, %s226_s18  }
   0x6   :  { %s227_s19 = smov [#allocation5]  }
   0x7   :  { %s29_s20 = sshll.u32 %s227_s19, 4  ;;  %s30_s20 = int_to_ptr.vmem [resolvable:$true] %s29_s20 }
   0x8   :  { %35 = dma.hbm_to_vmem [thread:$0]  %s28_s16, 512, %s30_s20, [#allocation6], %s225_s17, %s225_s17, %s226_s18  }
   0x9   :  { %218 = dma.done.wait [#allocation3], 512  }
   0xa   :  { %219 = vsyncadd [#allocation3], 4294966784 }
   0xb   :  { %220 = dma.done.wait [#allocation6], 512  }
   0xc   :  { %221 = vsyncadd [#allocation6], 4294966784  ;;  %v51_v0 = vld [vmem:[#allocation5 + $0x18] sm:$0xff]  ;;  %v50_v1 = vld [vmem:[#allocation5 + $0x10] sm:$0xff]  ;;  %vm52_vm0 = vcmask 261120   ;;  %vm98_vm1 = vcmask 257024  }
   0xd   :  { %128 = vmatpush.msra.mxu2 %v51_v0  ;;  %129 = vmatpush.msra.mxu3 %v51_v0  ;;  %v49_v2 = vld [vmem:[#allocation5 + $0x8] sm:$0xff]  ;;  %v48_v3 = vld [vmem:[#allocation5] sm:$0xff]  ;;  %v46_v4 = vld [vmem:[#allocation2 + $0x10] sm:$0xff]  ;;  %s228_s0 = smov [#allocation7]   ;;  %s109_s23 = sshll.u32 %s261_s2, 4  ;;  %s110_s23 = int_to_ptr.hbm [resolvable:$true] %s109_s23 }
   0xe   :  { %77 = vmatpush.msra.mxu0 %v51_v0  ;;  %127 = vmatpush.msra.mxu1 %v51_v0  ;;  %v47_v5 = vld [vmem:[#allocation2 + $0x18] sm:$0xff]  ;;  %v44_v6 = vld [vmem:[#allocation2] sm:$0xff]  ;;  %v45_v7 = vld [vmem:[#allocation2 + $0x8] sm:$0xff]  ;;  %s107_s1 = sshll.u32 %s228_s0, 4  ;;  %s229_s24 = smov 64   ;;  %s108_s1 = int_to_ptr.vmem [resolvable:$true] %s107_s1 }
   0xf   :  { %131 = vmatpush.msra.mxu2 %v50_v1  ;;  %132 = vmatpush.msra.mxu3 %v50_v1  ;;  %s230_s25 = smov 4  }
  0x10   :  { %78 = vmatpush.msra.mxu0 %v50_v1  ;;  %130 = vmatpush.msra.mxu1 %v50_v1 }
  0x11   :  { %134 = vmatpush.msra.mxu2 %v49_v2  ;;  %135 = vmatpush.msra.mxu3 %v49_v2 }
  0x12   :  { %79 = vmatpush.msra.mxu0 %v49_v2  ;;  %133 = vmatpush.msra.mxu1 %v49_v2 }
  0x13   :  { %137 = vmatpush.msra.mxu2 %v48_v3  ;;  %138 = vmatpush.msra.mxu3 %v48_v3 }
  0x14   :  { %125 = vmatmul.msk.f32.vlgmr.msra.gmra.mxu2 %vm52_vm0, %v46_v4  ;;  %126 = vmatmul.msk.f32.vlgmr.msra.gmra.mxu3 %vm52_vm0, %v47_v5 }
  0x15   :  { %80 = vmatpush.msra.mxu0 %v48_v3  ;;  %136 = vmatpush.msra.mxu1 %v48_v3 }
  0x16   :  { %123 = vmatmul.msk.f32.vlgmr.msra.gmra.mxu0 %vm52_vm0, %v44_v6  ;;  %124 = vmatmul.msk.f32.vlgmr.msra.gmra.mxu1 %vm52_vm0, %v45_v7 }
  0x93   :  { %v82_v8 = vpop.f32.mrf.mxu0  ;;  %v85_v9 = vpop.f32.mrf.mxu1 }
  0x94   :  { %v94_v10 = vpack.c.bf16 %v82_v8, %v82_v8  ;;  %v95_v11 = vpack.c.bf16 %v85_v9, %v85_v9 }
  0x96   :  { %99 = vst.msk [vmem:[#allocation7] sm:$0xf] %vm98_vm1, %v94_v10 }
  0x97   :  { %100 = vst.msk [vmem:[#allocation7 + $0x4] sm:$0xf] %vm98_vm1, %v95_v11  ;;  %v88_v12 = vpop.f32.mrf.mxu2  ;;  %v91_v13 = vpop.f32.mrf.mxu3 }
  0x98   :  { %v96_v14 = vpack.c.bf16 %v88_v12, %v88_v12  ;;  %v97_v15 = vpack.c.bf16 %v91_v13, %v91_v13 }
  0x9a   :  { %101 = vst.msk [vmem:[#allocation7 + $0x8] sm:$0xf] %vm98_vm1, %v96_v14 }
  0x9b   :  { %102 = vst.msk [vmem:[#allocation7 + $0xc] sm:$0xf] %vm98_vm1, %v97_v15 }
  0x9c   :  { %115 = dma.vmem_to_hbm [thread:$0]  %s108_s1, 256, %s110_s23, [#allocation4], %s229_s24, %s229_s24, %s230_s25  }
  0x9d   :  { %222 = dma.done.wait [#allocation4], 256  }
  0x9e   :  { %223 = vsyncadd [#allocation4], 4294967040 }
  0x9f   :  { %120 = vsyncpa [#allocation3], 1 }
  0xa0   :  { %121 = vsyncpa [#allocation6], 1 }
  0xa1   :  { %122 = vsyncpa [#allocation4], 1 }

</bundles_post_ra>
